<compile_context>
chip_gen: v5e
topology: v5e:2x2
jax: 0.10.0
libtpu: 0.0.40
codegen_flags: <defaults>
</compile_context>

<pallas_src>
import jax
import jax.numpy as jnp
import numpy as np
from jax import lax
from jax.experimental import pallas as pl
from jax.experimental.pallas import tpu as pltpu

_BIG = 1e30   # stand-in for +inf inside the kernel (2 * _BIG is still finite in f32)
_D = 8        # xyz (+ norm/mask lanes) padded to 8 so the contraction dim is tile friendly


def _round_up(x, m):
    return ((x + m - 1) // m) * m


_TILE_CONFIG_CACHE = None


def _tile_config():
    """Per-generation (tn_cap, tm_cap, vmem_limit_bytes)."""
    global _TILE_CONFIG_CACHE
    if _TILE_CONFIG_CACHE is not None:
        return _TILE_CONFIG_CACHE
    vmem_bytes = None
    try:
        info = pltpu.get_tpu_info()
        vmem_bytes = getattr(info, "vmem_capacity_bytes", None)
    except Exception:
        vmem_bytes = None
    if vmem_bytes is None:
        vmem_bytes = 64 * 1024 * 1024  # conservative default (v7x-sized)
    if vmem_bytes >= 100 * 1024 * 1024:
        # v5e / v6e (128 MiB VMEM): big tiles amortize per-grid-step overhead.
        cfg = (1024, 4096, 96 * 1024 * 1024)
    else:
        # v7x (64 MiB VMEM per TensorCore): keep the (tn, tm) f32 distance tile <= 8 MiB.
        cfg = (512, 4096, 36 * 1024 * 1024)
    _TILE_CONFIG_CACHE = cfg
    return cfg


# ----------------------------- Pallas kernel ---------------------------------
def _chamfer_kernel(p_ref, q_ref, d1_ref, d2_ref, rm_acc):
    """Fused bidirectional masked min-squared-distance.

    p_ref : (1, tn, 8)  output points, rows [-2x,-2y,-2z, 1, pn_i, 0,0,0]
    q_ref : (1, 8, tm)  target points (D-major), cols [x, y, z, qn_j, 1, 0,0,0]^T
    d1_ref: (1, tn, 1)  per-output-point min  (accumulated over j, written at j == last)
    d2_ref: (1, 1, Mp)  per-target-point min  (resident accumulator across the (i, j) sweep)
    rm_acc: (tn, 1)     VMEM scratch for the running row min
    """
    i = pl.program_id(1)
    j = pl.program_id(2)
    nj = pl.num_programs(2)
    tm = q_ref.shape[2]

    @pl.when(j == 0)
    def _():
        rm_acc[...] = jnp.full(rm_acc.shape, _BIG, rm_acc.dtype)

    p = p_ref[0]                                    # (tn, 8)
    q = q_ref[0]                                    # (8, tm)

    # The norms and masks are folded into the spare K lanes, so the matmul alone produces
    # d_ij = ||p_i - q_j||^2 (+ BIG penalty for invalid points).
    d = lax.dot_general(p, q, (((1,), (0,)), ((), ())),
                        preferred_element_type=jnp.float32)      # (tn, tm)

    # direction 1: per output point, running min over target tiles
    rm_acc[...] = jnp.minimum(rm_acc[...], jnp.min(d, axis=1, keepdims=True))

    @pl.when(j == nj - 1)
    def _():
        d1_ref[0] = rm_acc[...]

    # direction 2: per target point, running min over output tiles (resident accumulator)
    cm = jnp.min(d, axis=0, keepdims=True)          # (1, tm)
    off = pl.multiple_of(j * tm, 128)

    @pl.when(i == 0)
    def _():
        d2_ref[0, :, pl.ds(off, tm)] = cm

    @pl.when(i > 0)
    def _():
        d2_ref[0, :, pl.ds(off, tm)] = jnp.minimum(d2_ref[0, :, pl.ds(off, tm)], cm)


# ------------------------------- wrappers -------------------------------------
def _prep_output_cloud(xyz, mask, tn):
    """(BT,N,3) xyz + (BT,N) validity -> P rows [-2x,-2y,-2z,1,pn,0,0,0] and the mask."""
    bt, n, _ = xyz.shape
    npad = _round_up(n, tn)
    m = jnp.zeros((bt, npad), jnp.float32).at[:, :n].set(mask.astype(jnp.float32))
    x = jnp.zeros((bt, npad, 3), jnp.float32).at[:, :n, :].set(xyz.astype(jnp.float32))
    x = x * m[..., None]
    pn = jnp.sum(x * x, axis=-1) + (1.0 - m) * _BIG              # (BT, Np)
    ones = jnp.ones((bt, npad, 1), jnp.float32)
    zeros = jnp.zeros((bt, npad, 3), jnp.float32)
    p = jnp.concatenate([-2.0 * x, ones, pn[..., None], zeros], axis=-1)   # (BT, Np, 8)
    return p, m


def _prep_target_cloud(xyz, mask, tm):
    """(BT,M,3) xyz + (BT,M) validity -> D-major Q cols [x,y,z,qn,1,0,0,0]^T and the mask."""
    bt, mq, _ = xyz.shape
    mpad = _round_up(mq, tm)
    msk = jnp.zeros((bt, mpad), jnp.float32).at[:, :mq].set(mask.astype(jnp.float32))
    x = jnp.zeros((bt, mpad, 3), jnp.float32).at[:, :mq, :].set(xyz.astype(jnp.float32))
    x = x * msk[..., None]
    qn = jnp.sum(x * x, axis=-1) + (1.0 - msk) * _BIG            # (BT, Mp)
    ones = jnp.ones((bt, mpad, 1), jnp.float32)
    zeros = jnp.zeros((bt, mpad, 3), jnp.float32)
    q_rows = jnp.concatenate([x, qn[..., None], ones, zeros], axis=-1)     # (BT, Mp, 8)
    q = jnp.transpose(q_rows, (0, 2, 1))                                   # (BT, 8, Mp)
    return q, msk


def chamfer_means(p_xyz, p_mask, q_xyz, q_mask):
    """mean_i min_j ||p_i - q_j||^2 + mean_j min_i ||p_i - q_j||^2, batched over leading dim."""
    bt, n, _ = p_xyz.shape
    _, mq, _ = q_xyz.shape
    tn_cap, tm_cap, vmem_limit = _tile_config()
    tn = min(tn_cap, _round_up(n, 128))
    tm = min(tm_cap, _round_up(mq, 128))
    p, pm = _prep_output_cloud(p_xyz, p_mask, tn)
    q, qm = _prep_target_cloud(q_xyz, q_mask, tm)
    npad, mpad = p.shape[1], q.shape[2]

    d1, d2 = pl.pallas_call(
        _chamfer_kernel,
        out_shape=(jax.ShapeDtypeStruct((bt, npad, 1), jnp.float32),
                   jax.ShapeDtypeStruct((bt, 1, mpad), jnp.float32)),
        grid_spec=pltpu.PrefetchScalarGridSpec(
            num_scalar_prefetch=0,
            grid=(bt, npad // tn, mpad // tm),
            in_specs=[
                pl.BlockSpec((1, tn, _D), lambda b, i, j: (b, i, 0)),    # P (augmented rows)
                pl.BlockSpec((1, _D, tm), lambda b, i, j: (b, 0, j)),    # Q (D-major, augmented)
            ],
            out_specs=(
                pl.BlockSpec((1, tn, 1), lambda b, i, j: (b, i, 0)),     # d1: per output point
                pl.BlockSpec((1, 1, mpad), lambda b, i, j: (b, 0, 0)),   # d2: resident per cloud
            ),
            scratch_shapes=[pltpu.VMEM((tn, 1), jnp.float32)],
        ),
        compiler_params=pltpu.CompilerParams(
            dimension_semantics=("parallel", "arbitrary", "arbitrary"),
            vmem_limit_bytes=vmem_limit),
    )(p, q)

    d1 = jnp.maximum(d1[:, :, 0], 0.0)        # clamp tiny negative cancellation noise
    d2 = jnp.maximum(d2[:, 0, :], 0.0)
    n_p = jnp.sum(pm, axis=1)
    n_q = jnp.sum(qm, axis=1)
    m1 = jnp.sum(d1 * pm, axis=1) / jnp.maximum(n_p, 1.0)
    m2 = jnp.sum(d2 * qm, axis=1) / jnp.maximum(n_q, 1.0)
    # Frames with an empty output or target cloud contribute 0 (reference skips them).
    both_nonempty = (n_p > 0.0) & (n_q > 0.0)
    return jnp.where(both_nonempty, m1 + m2, 0.0)                # (BT,)


def make_ray_dirs(H, W, fov_up_deg=3.0, fov_down_deg=-25.0):
    """Per-pixel unit ray directions of the range view (projection.get_valid_points...)."""
    fov_up = np.deg2rad(fov_up_deg)
    fov_down = np.deg2rad(fov_down_deg)
    rows = (np.arange(H) + 0.5) / H
    pitch = fov_up - rows * (fov_up - fov_down)
    cols = (np.arange(W) + 0.5) / W
    yaw = -(cols * 2.0 * np.pi - np.pi)
    yaw_g, pitch_g = np.meshgrid(yaw, pitch)          # (H, W)
    x = np.cos(pitch_g) * np.cos(yaw_g)
    y = np.cos(pitch_g) * np.sin(yaw_g)
    z = np.sin(pitch_g)
    return jnp.asarray(np.stack([x, y, z], axis=-1), dtype=jnp.float32)  # (H, W, 3)


@jax.jit
def _chamfer_core(rv, mask, target, mask_threshold):
    B, T, H, W = rv.shape
    dirs = make_ray_dirs(H, W)                                    # trace-time constant

    # projection.get_masked_range_view: invalid pixels -> -1
    masked_rv = jnp.where(mask > mask_threshold, rv, -1.0)

    out_valid = (masked_rv > 0.0).reshape(B * T, H * W)
    out_xyz = (masked_rv[..., None] * dirs).reshape(B * T, H * W, 3)

    tgt_valid = (target[:, :, 0] > 0.0).reshape(B * T, H * W)
    tgt_xyz = jnp.transpose(target[:, :, 1:4], (0, 1, 3, 4, 2)).reshape(B * T, H * W, 3)

    cd = chamfer_means(out_xyz, out_valid, tgt_xyz, tgt_valid)    # (B*T,)
    return cd.reshape(B, T).T                                     # (T, B)


def chamfer_distance_forward(output, target, mos_label, n_samples, *, mask_threshold=0.5):
    """Mirrors chamfer_distance.forward: returns ({s: mean_b cd[s,b]}, tensor[T, B])."""
    # TODO(synk): the n_samples != -1 path uses python random.sample in the reference
    #             (nondeterministic); only the full-cloud (n_samples == -1) path is implemented.
    # TODO(synk): the mos-point branches of the reference never affect the returned loss; skipped.
    del mos_label, n_samples
    cd_tensor = _chamfer_core(output["rv"], output["mask"], target, mask_threshold)
    T = cd_tensor.shape[0]
    cd_dict = {s: jnp.mean(cd_tensor[s]) for s in range(T)}
    return cd_dict, cd_tensor


# --------------------------- pure-NumPy reference ------------------------------
def _reference_chamfer(rv, mask_prob, target, mask_threshold=0.5):
    rv = np.asarray(rv); mask_prob = np.asarray(mask_prob); target = np.asarray(target)
    B, T, H, W = rv.shape
    dirs = np.asarray(make_ray_dirs(H, W))
    cd = np.zeros((T, B), np.float64)
    for b in range(B):
        for s in range(T):
            r = np.where(mask_prob[b, s] > mask_threshold, rv[b, s], -1.0)
            pv = (r > 0.0).reshape(-1)
            p = (r[..., None] * dirs).reshape(-1, 3)[pv]
            tv = (target[b, s, 0] > 0.0).reshape(-1)
            q = np.transpose(target[b, s, 1:4], (1, 2, 0)).reshape(-1, 3)[tv]
            if p.shape[0] == 0 or q.shape[0] == 0:
                continue
            d = ((p[:, None, :] - q[None, :, :]) ** 2).sum(-1)
            cd[s, b] = d.min(axis=1).mean() + d.min(axis=0).mean()
    return cd


# --------------------------------- main ---------------------------------------
if __name__ == "__main__":
    B, T, H, W = 2, 2, 16, 16
    key = jax.random.PRNGKey(0)
    k_rv, k_msk, k_tr, k_tv, k_int, k_mos = jax.random.split(key, 6)

    dirs = make_ray_dirs(H, W)

    # predicted range view + mask probabilities
    rv = jax.random.uniform(k_rv, (B, T, H, W), jnp.float32, minval=1.0, maxval=10.0)
    mask_prob = jax.random.uniform(k_msk, (B, T, H, W), jnp.float32)
    # make one frame's output cloud empty to exercise the empty-cloud guard
    mask_prob = mask_prob.at[0, 1].set(0.0)
    output = {"rv": rv, "mask": mask_prob}

    # ground-truth range view target: (B, T, 5, H, W) = [validity/range, x, y, z, intensity]
    t_range = jax.random.uniform(k_tr, (B, T, H, W), jnp.float32, minval=1.0, maxval=10.0)
    t_valid = jax.random.uniform(k_tv, (B, T, H, W), jnp.float32) > 0.2
    t_range = jnp.where(t_valid, t_range, -1.0)
    t_xyz = jnp.where(t_valid[..., None], t_range[..., None] * dirs, 0.0)   # (B,T,H,W,3)
    t_xyz = jnp.transpose(t_xyz, (0, 1, 4, 2, 3))                           # (B,T,3,H,W)
    t_int = jax.random.uniform(k_int, (B, T, 1, H, W), jnp.float32)
    target = jnp.concatenate([t_range[:, :, None], t_xyz, t_int], axis=2)   # (B,T,5,H,W)

    mos_label = (jax.random.uniform(k_mos, (B, T, H, W)) > 0.5).astype(jnp.float32)

    cd_dict, cd_tensor = chamfer_distance_forward(output, target, mos_label, n_samples=-1)
    cd_tensor = jax.block_until_ready(cd_tensor)
    for s in cd_dict:
        jax.block_until_ready(cd_dict[s])

    assert cd_tensor.shape == (T, B)
    assert bool(jnp.all(jnp.isfinite(cd_tensor)))

    # sanity check vs an exact NumPy reference (tolerant of MXU/cancellation rounding)
    ref = _reference_chamfer(rv, mask_prob, target)
    assert np.allclose(np.asarray(cd_tensor), ref, rtol=0.05, atol=0.02), (
        np.asarray(cd_tensor), ref)

    print("KERNEL_OK")
</pallas_src>

<mosaic_0001>
module attributes {stable_mosaic.version = 11 : i64} {
  func.func @_chamfer_kernel(%arg0: i32, %arg1: i32, %arg2: i32, %arg3: memref<1x256x8xf32, #tpu.memory_space<vmem>>, %arg4: memref<1x8x256xf32, #tpu.memory_space<vmem>>, %arg5: memref<1x256x1xf32, #tpu.memory_space<vmem>>, %arg6: memref<1x1x256xf32, #tpu.memory_space<vmem>>, %arg7: memref<256x1xf32, #tpu.memory_space<vmem>>) attributes {dimension_semantics = [#tpu.dimension_semantics<parallel>, #tpu.dimension_semantics<arbitrary>, #tpu.dimension_semantics<arbitrary>], iteration_bounds = array<i64: 4, 1, 1>, scalar_prefetch = 0 : i64, scratch_operands = 1 : i64, tpu.core_type = #tpu.core_type<tc>, window_params = [{transform_indices = @transform_0, window_bounds = array<i64: 1, 256, 8>}, {transform_indices = @transform_1, window_bounds = array<i64: 1, 8, 256>}, {transform_indices = @transform_2, window_bounds = array<i64: 1, 256, 1>}, {transform_indices = @transform_3, window_bounds = array<i64: 1, 1, 256>}]} {
    %c0_i32 = arith.constant 0 : i32
    %0 = arith.cmpi eq, %arg2, %c0_i32 : i32
    %1 = arith.extui %0 : i1 to i32
    %c0_i32_0 = arith.constant 0 : i32
    %2 = arith.cmpi ne, %1, %c0_i32_0 : i32
    scf.if %2 {
      %cst_18 = arith.constant 1.000000e+30 : f32
      %26 = vector.broadcast %cst_18 : f32 to vector<256x1xf32>
      %c0_19 = arith.constant 0 : index
      %c0_20 = arith.constant 0 : index
      %27 = vector.load %arg7[%c0_19, %c0_20] : memref<256x1xf32, #tpu.memory_space<vmem>>, vector<256x1xf32>
      tpu.vector_store %arg7[%c0_19, %c0_20], %26 {strides = array<i32>} : memref<256x1xf32, #tpu.memory_space<vmem>>, vector<256x1xf32>,
    } else {
    }
    %c0 = arith.constant 0 : index
    %c0_1 = arith.constant 0 : index
    %c0_2 = arith.constant 0 : index
    %3 = vector.load %arg3[%c0, %c0_1, %c0_2] : memref<1x256x8xf32, #tpu.memory_space<vmem>>, vector<1x256x8xf32>
    %4 = vector.shape_cast %3 : vector<1x256x8xf32> to vector<256x8xf32>
    %c0_3 = arith.constant 0 : index
    %c0_4 = arith.constant 0 : index
    %c0_5 = arith.constant 0 : index
    %5 = vector.load %arg4[%c0_3, %c0_4, %c0_5] : memref<1x8x256xf32, #tpu.memory_space<vmem>>, vector<1x8x256xf32>
    %6 = vector.shape_cast %5 : vector<1x8x256xf32> to vector<8x256xf32>
    %cst = arith.constant dense<0.000000e+00> : vector<256x256xf32>
    %7 = tpu.matmul %4, %6, %cst {dimension_numbers = #tpu.dot_dimension_numbers<[1], [0], [0], [1], [0, 0, 1, 1], [], []>} : vector<256x8xf32>, vector<8x256xf32>, vector<256x256xf32> -> vector<256x256xf32>
    %c0_6 = arith.constant 0 : index
    %c0_7 = arith.constant 0 : index
    %8 = vector.load %arg7[%c0_6, %c0_7] : memref<256x1xf32, #tpu.memory_space<vmem>>, vector<256x1xf32>
    %cst_8 = arith.constant dense<0x7F800000> : vector<256xf32>
    %9 = vector.multi_reduction <minimumf>, %7, %cst_8 [1] : vector<256x256xf32> to vector<256xf32>
    %10 = vector.shape_cast %9 : vector<256xf32> to vector<256x1xf32>
    %11 = arith.minimumf %8, %10 : vector<256x1xf32>
    %c0_9 = arith.constant 0 : index
    %c0_10 = arith.constant 0 : index
    %12 = vector.load %arg7[%c0_9, %c0_10] : memref<256x1xf32, #tpu.memory_space<vmem>>, vector<256x1xf32>
    tpu.vector_store %arg7[%c0_9, %c0_10], %11 {strides = array<i32>} : memref<256x1xf32, #tpu.memory_space<vmem>>, vector<256x1xf32>,
    %c0_i32_11 = arith.constant 0 : i32
    %13 = arith.cmpi eq, %arg2, %c0_i32_11 : i32
    %14 = arith.extui %13 : i1 to i32
    %c0_i32_12 = arith.constant 0 : i32
    %15 = arith.cmpi ne, %14, %c0_i32_12 : i32
    scf.if %15 {
      %c0_18 = arith.constant 0 : index
      %c0_19 = arith.constant 0 : index
      %26 = vector.load %arg7[%c0_18, %c0_19] : memref<256x1xf32, #tpu.memory_space<vmem>>, vector<256x1xf32>
      %c0_20 = arith.constant 0 : index
      %c0_21 = arith.constant 0 : index
      %c0_22 = arith.constant 0 : index
      %27 = vector.load %arg5[%c0_20, %c0_21, %c0_22] : memref<1x256x1xf32, #tpu.memory_space<vmem>>, vector<1x256x1xf32>
      %28 = vector.shape_cast %27 : vector<1x256x1xf32> to vector<256x1xf32>
      %29 = vector.shape_cast %26 : vector<256x1xf32> to vector<1x256x1xf32>
      tpu.vector_store %arg5[%c0_20, %c0_21, %c0_22], %29 {strides = array<i32>} : memref<1x256x1xf32, #tpu.memory_space<vmem>>, vector<1x256x1xf32>,
    } else {
    }
    %cst_13 = arith.constant dense<0x7F800000> : vector<256xf32>
    %16 = vector.multi_reduction <minimumf>, %7, %cst_13 [0] : vector<256x256xf32> to vector<256xf32>
    %17 = vector.shape_cast %16 : vector<256xf32> to vector<1x256xf32>
    %c256_i32 = arith.constant 256 : i32
    %18 = arith.muli %arg2, %c256_i32 : i32
    %19 = tpu.assume_multiple %18, 128 : i32
    %c0_i32_14 = arith.constant 0 : i32
    %20 = arith.cmpi eq, %arg1, %c0_i32_14 : i32
    %21 = arith.extui %20 : i1 to i32
    %c0_i32_15 = arith.constant 0 : i32
    %22 = arith.cmpi ne, %21, %c0_i32_15 : i32
    scf.if %22 {
      %c0_18 = arith.constant 0 : index
      %c0_19 = arith.constant 0 : index
      %26 = arith.index_cast %19 : i32 to index
      %27 = vector.load %arg6[%c0_18, %c0_19, %26] : memref<1x1x256xf32, #tpu.memory_space<vmem>>, vector<1x1x256xf32>
      %28 = vector.shape_cast %27 : vector<1x1x256xf32> to vector<1x256xf32>
      %29 = vector.shape_cast %17 : vector<1x256xf32> to vector<1x1x256xf32>
      tpu.vector_store %arg6[%c0_18, %c0_19, %26], %29 {strides = array<i32>} : memref<1x1x256xf32, #tpu.memory_space<vmem>>, vector<1x1x256xf32>,
    } else {
    }
    %c0_i32_16 = arith.constant 0 : i32
    %23 = arith.cmpi sgt, %arg1, %c0_i32_16 : i32
    %24 = arith.extui %23 : i1 to i32
    %c0_i32_17 = arith.constant 0 : i32
    %25 = arith.cmpi ne, %24, %c0_i32_17 : i32
    scf.if %25 {
      %c0_18 = arith.constant 0 : index
      %c0_19 = arith.constant 0 : index
      %26 = arith.index_cast %19 : i32 to index
      %27 = vector.load %arg6[%c0_18, %c0_19, %26] : memref<1x1x256xf32, #tpu.memory_space<vmem>>, vector<1x1x256xf32>
      %28 = vector.shape_cast %27 : vector<1x1x256xf32> to vector<1x256xf32>
      %29 = arith.minimumf %28, %17 : vector<1x256xf32>
      %c0_20 = arith.constant 0 : index
      %c0_21 = arith.constant 0 : index
      %30 = arith.index_cast %19 : i32 to index
      %31 = vector.load %arg6[%c0_20, %c0_21, %30] : memref<1x1x256xf32, #tpu.memory_space<vmem>>, vector<1x1x256xf32>
      %32 = vector.shape_cast %31 : vector<1x1x256xf32> to vector<1x256xf32>
      %33 = vector.shape_cast %29 : vector<1x256xf32> to vector<1x1x256xf32>
      tpu.vector_store %arg6[%c0_20, %c0_21, %30], %33 {strides = array<i32>} : memref<1x1x256xf32, #tpu.memory_space<vmem>>, vector<1x1x256xf32>,
    } else {
    }
    return
  }
  func.func @transform_0(%arg0: i32, %arg1: i32, %arg2: i32) -> (i32, i32, i32) {
    %c0_i32 = arith.constant 0 : i32
    %c0_i32_0 = arith.constant 0 : i32
    return %arg0, %arg1, %c0_i32 : i32, i32, i32
  }
  func.func @transform_1(%arg0: i32, %arg1: i32, %arg2: i32) -> (i32, i32, i32) {
    %c0_i32 = arith.constant 0 : i32
    %c0_i32_0 = arith.constant 0 : i32
    return %arg0, %c0_i32, %arg2 : i32, i32, i32
  }
  func.func @transform_2(%arg0: i32, %arg1: i32, %arg2: i32) -> (i32, i32, i32) {
    %c0_i32 = arith.constant 0 : i32
    %c0_i32_0 = arith.constant 0 : i32
    return %arg0, %arg1, %c0_i32 : i32, i32, i32
  }
  func.func @transform_3(%arg0: i32, %arg1: i32, %arg2: i32) -> (i32, i32, i32) {
    %c0_i32 = arith.constant 0 : i32
    %c0_i32_0 = arith.constant 0 : i32
    %c0_i32_1 = arith.constant 0 : i32
    return %arg0, %c0_i32, %c0_i32_0 : i32, i32, i32
  }
}

</mosaic_0001>

<bundles_post_ra>
// kernel: _chamfer_core.1
= control target key start
LH: loop header
LB: loop body
LE: loop exit
PB: predicated region body
PF: predicated region fallthrough
CT: control target
= control target key end

     0   :  { %s1325_s12 = smov 0   ;;  %s1327_s13 = smov 0   ;;  %s1734_s0 = inlined_call_operand.vmem [shape: f32[4,256,8], index: 0, kind: input, shape index: {}]   ;;  %s1735_s1 = inlined_call_operand.vmem [shape: f32[4,8,256], index: 1, kind: input, shape index: {}]   ;;  %s1736_s2 = inlined_call_operand.vmem [shape: f32[4,256,1], index: 2, kind: output, shape index: {0}]   ;;  %s1737_s3 = inlined_call_operand.vmem [shape: f32[4,1,256], index: 3, kind: output, shape index: {1}]  }
   0x1   :  { %s1329_s14 = smov 0  }
   0x2 LB: > { %s33_s15 = sadd.s32 1, %s1298_s13  ;;  %p1176_p0 = scmp.ge.s32.totalorder %s1302_s14, 1  ;;  %s1302_s14 = sphi %s1329_s14, %s14_s14   ;;  %s1298_s13 = sphi %s1327_s13, %s1739_s13   ;;  %s1294_s12 = sphi %s1325_s12, %s1738_s12  }
   0x3   : > { %p35_p1 = scmp.ge.s32.totalorder %s33_s15, 4  ;;  %p185_p2 = scmp.lt.s32.totalorder %s1302_s14, 5 }
   0x5   : > { %s1741_s15 = smov (%p35_p1, %s33_s15), 0  ;;  %p186_p3 = pnand %p1176_p0, %p185_p2 }
   0x6   : > { %p231_p4 = scmp.lt.s32.totalorder (!%p186_p3), %s1294_s12, 3 }
   0x7   : > { %189 = sbr.rel (%p186_p3) target bundleno = 402 (0x192), region = 28 }
   0xc   : > { %s1743_s12 = smov (!%p231_p4, %s1294_s12), 3  ;;  %vm335_vm0 = vcmask 64512   ;;  %vm268_vm1 = vcmask 7168   ;;  %vm1000_vm2 = vcmask 1040384  }
   0xd   : > { %s1250_s16 = sshll.u32 %s1743_s12, 8  ;;  %s1251_s17 = sshll.u32 %s1743_s12, 4 }
   0xe   : > { %s1352_s20 = scalar_lea.vmem %s1734_s0, %s1250_s16  ;;  %s248_s23 = scalar_lea.vmem %s1735_s1, %s1251_s17 }
   0xf   : > { %v333_v0 = vld [vmem:[%s248_s23] sm:$0xff]  ;;  %v334_v1 = vld [vmem:[%s248_s23 + $0x8] sm:$0xff]  ;;  %v303_v6 = vld [vmem:[%s1352_s20 + $0x10] sm:$0xff]  ;;  %s1624_s26 = scalar_lea.vmem %s1736_s2, %s1250_s16  ;;  %s1183_s27 = sshll.u32 %s1743_s12, 1 }
  0x10   : > { %v301_v2 = vld [vmem:[%s1352_s20] sm:$0xff]  ;;  %447 = vmatpush.msra.mxu0 %v333_v0  ;;  %1253 = vmatpush.msra.mxu2 %v333_v0  ;;  %v302_v4 = vld [vmem:[%s1352_s20 + $0x8] sm:$0xff]  ;;  %v319_v7 = vld [vmem:[%s1352_s20 + $0x90] sm:$0xff]  ;;  %s263_s30 = scalar_lea.vmem %s1737_s3, %s1183_s27 }
  0x11   : > { %v317_v3 = vld [vmem:[%s1352_s20 + $0x80] sm:$0xff]  ;;  %560 = vmatpush.msra.mxu1 %v334_v1  ;;  %1254 = vmatpush.msra.mxu3 %v334_v1  ;;  %v318_v5 = vld [vmem:[%s1352_s20 + $0x88] sm:$0xff]  ;;  %v304_v8 = vld [vmem:[%s1352_s20 + $0x18] sm:$0xff] }
  0x12   : > { %1184 = vmatmul.msk.f32.vlgmr.msra.gmra.mxu0 %vm335_vm0, %v301_v2  ;;  %1200 = vmatmul.msk.f32.vlgmr.msra.gmra.mxu2 %vm335_vm0, %v317_v3  ;;  %v320_v9 = vld [vmem:[%s1352_s20 + $0x98] sm:$0xff]  ;;  %v305_v10 = vld [vmem:[%s1352_s20 + $0x20] sm:$0xff]  ;;  %v306_v12 = vld [vmem:[%s1352_s20 + $0x28] sm:$0xff] }
  0x13   : > { %1216 = vmatmul.msk.f32.vlgmr.msra.gmra.mxu1 %vm335_vm0, %v301_v2  ;;  %1232 = vmatmul.msk.f32.vlgmr.msra.gmra.mxu3 %vm335_vm0, %v317_v3  ;;  %v321_v11 = vld [vmem:[%s1352_s20 + $0xa0] sm:$0xff]  ;;  %v322_v13 = vld [vmem:[%s1352_s20 + $0xa8] sm:$0xff]  ;;  %v307_v14 = vld [vmem:[%s1352_s20 + $0x30] sm:$0xff] }
  0x14   : > { %v323_v15 = vld [vmem:[%s1352_s20 + $0xb0] sm:$0xff]  ;;  %v308_v16 = vld [vmem:[%s1352_s20 + $0x38] sm:$0xff]  ;;  %v309_v18 = vld [vmem:[%s1352_s20 + $0x40] sm:$0xff] }
  0x15   : > { %v324_v17 = vld [vmem:[%s1352_s20 + $0xb8] sm:$0xff]  ;;  %v325_v19 = vld [vmem:[%s1352_s20 + $0xc0] sm:$0xff]  ;;  %v310_v20 = vld [vmem:[%s1352_s20 + $0x48] sm:$0xff] }
  0x16   : > { %v326_v21 = vld [vmem:[%s1352_s20 + $0xc8] sm:$0xff]  ;;  %v311_v22 = vld [vmem:[%s1352_s20 + $0x50] sm:$0xff]  ;;  %v312_v24 = vld [vmem:[%s1352_s20 + $0x58] sm:$0xff] }
  0x17   : > { %v327_v23 = vld [vmem:[%s1352_s20 + $0xd0] sm:$0xff]  ;;  %v328_v25 = vld [vmem:[%s1352_s20 + $0xd8] sm:$0xff]  ;;  %v313_v26 = vld [vmem:[%s1352_s20 + $0x60] sm:$0xff] }
  0x18   : > { %v329_v27 = vld [vmem:[%s1352_s20 + $0xe0] sm:$0xff]  ;;  %v314_v28 = vld [vmem:[%s1352_s20 + $0x68] sm:$0xff]  ;;  %v315_v30 = vld [vmem:[%s1352_s20 + $0x70] sm:$0xff] }
  0x19   : > { %v330_v29 = vld [vmem:[%s1352_s20 + $0xe8] sm:$0xff]  ;;  %v331_v31 = vld [vmem:[%s1352_s20 + $0xf0] sm:$0xff]  ;;  %v316_v32 = vld [vmem:[%s1352_s20 + $0x78] sm:$0xff] }
  0x1a   : > { %1185 = vmatmul.msk.f32.gmra.mxu0 %vm335_vm0, %v302_v4  ;;  %1201 = vmatmul.msk.f32.gmra.mxu2 %vm335_vm0, %v318_v5  ;;  %v332_v33 = vld [vmem:[%s1352_s20 + $0xf8] sm:$0xff] }
  0x1b   : > { %1217 = vmatmul.msk.f32.gmra.mxu1 %vm335_vm0, %v302_v4  ;;  %1233 = vmatmul.msk.f32.gmra.mxu3 %vm335_vm0, %v318_v5 }
  0x22   : > { %1186 = vmatmul.msk.f32.gmra.mxu0 %vm335_vm0, %v303_v6  ;;  %1202 = vmatmul.msk.f32.gmra.mxu2 %vm335_vm0, %v319_v7 }
  0x23   : > { %1218 = vmatmul.msk.f32.gmra.mxu1 %vm335_vm0, %v303_v6  ;;  %1234 = vmatmul.msk.f32.gmra.mxu3 %vm335_vm0, %v319_v7 }
  0x2a   : > { %1187 = vmatmul.msk.f32.gmra.mxu0 %vm335_vm0, %v304_v8  ;;  %1203 = vmatmul.msk.f32.gmra.mxu2 %vm335_vm0, %v320_v9 }
  0x2b   : > { %1219 = vmatmul.msk.f32.gmra.mxu1 %vm335_vm0, %v304_v8  ;;  %1235 = vmatmul.msk.f32.gmra.mxu3 %vm335_vm0, %v320_v9 }
  0x32   : > { %1188 = vmatmul.msk.f32.gmra.mxu0 %vm335_vm0, %v305_v10  ;;  %1204 = vmatmul.msk.f32.gmra.mxu2 %vm335_vm0, %v321_v11 }
  0x33   : > { %1220 = vmatmul.msk.f32.gmra.mxu1 %vm335_vm0, %v305_v10  ;;  %1236 = vmatmul.msk.f32.gmra.mxu3 %vm335_vm0, %v321_v11 }
  0x3a   : > { %1189 = vmatmul.msk.f32.gmra.mxu0 %vm335_vm0, %v306_v12  ;;  %1205 = vmatmul.msk.f32.gmra.mxu2 %vm335_vm0, %v322_v13 }
  0x3b   : > { %1221 = vmatmul.msk.f32.gmra.mxu1 %vm335_vm0, %v306_v12  ;;  %1237 = vmatmul.msk.f32.gmra.mxu3 %vm335_vm0, %v322_v13 }
  0x42   : > { %1190 = vmatmul.msk.f32.gmra.mxu0 %vm335_vm0, %v307_v14  ;;  %1206 = vmatmul.msk.f32.gmra.mxu2 %vm335_vm0, %v323_v15 }
  0x43   : > { %1222 = vmatmul.msk.f32.gmra.mxu1 %vm335_vm0, %v307_v14  ;;  %1238 = vmatmul.msk.f32.gmra.mxu3 %vm335_vm0, %v323_v15 }
  0x4a   : > { %1191 = vmatmul.msk.f32.gmra.mxu0 %vm335_vm0, %v308_v16  ;;  %1207 = vmatmul.msk.f32.gmra.mxu2 %vm335_vm0, %v324_v17 }
  0x4b   : > { %1223 = vmatmul.msk.f32.gmra.mxu1 %vm335_vm0, %v308_v16  ;;  %1239 = vmatmul.msk.f32.gmra.mxu3 %vm335_vm0, %v324_v17 }
  0x52   : > { %1192 = vmatmul.msk.f32.gmra.mxu0 %vm335_vm0, %v309_v18  ;;  %1208 = vmatmul.msk.f32.gmra.mxu2 %vm335_vm0, %v325_v19 }
  0x53   : > { %1224 = vmatmul.msk.f32.gmra.mxu1 %vm335_vm0, %v309_v18  ;;  %1240 = vmatmul.msk.f32.gmra.mxu3 %vm335_vm0, %v325_v19 }
  0x5a   : > { %1193 = vmatmul.msk.f32.gmra.mxu0 %vm335_vm0, %v310_v20  ;;  %1209 = vmatmul.msk.f32.gmra.mxu2 %vm335_vm0, %v326_v21 }
  0x5b   : > { %1225 = vmatmul.msk.f32.gmra.mxu1 %vm335_vm0, %v310_v20  ;;  %1241 = vmatmul.msk.f32.gmra.mxu3 %vm335_vm0, %v326_v21 }
  0x62   : > { %1194 = vmatmul.msk.f32.gmra.mxu0 %vm335_vm0, %v311_v22  ;;  %1210 = vmatmul.msk.f32.gmra.mxu2 %vm335_vm0, %v327_v23 }
  0x63   : > { %1226 = vmatmul.msk.f32.gmra.mxu1 %vm335_vm0, %v311_v22  ;;  %1242 = vmatmul.msk.f32.gmra.mxu3 %vm335_vm0, %v327_v23 }
  0x6a   : > { %1195 = vmatmul.msk.f32.gmra.mxu0 %vm335_vm0, %v312_v24  ;;  %1211 = vmatmul.msk.f32.gmra.mxu2 %vm335_vm0, %v328_v25 }
  0x6b   : > { %1227 = vmatmul.msk.f32.gmra.mxu1 %vm335_vm0, %v312_v24  ;;  %1243 = vmatmul.msk.f32.gmra.mxu3 %vm335_vm0, %v328_v25 }
  0x72   : > { %1196 = vmatmul.msk.f32.gmra.mxu0 %vm335_vm0, %v313_v26  ;;  %1212 = vmatmul.msk.f32.gmra.mxu2 %vm335_vm0, %v329_v27 }
  0x73   : > { %1228 = vmatmul.msk.f32.gmra.mxu1 %vm335_vm0, %v313_v26  ;;  %1244 = vmatmul.msk.f32.gmra.mxu3 %vm335_vm0, %v329_v27 }
  0x7a   : > { %1197 = vmatmul.msk.f32.gmra.mxu0 %vm335_vm0, %v314_v28  ;;  %1213 = vmatmul.msk.f32.gmra.mxu2 %vm335_vm0, %v330_v29 }
  0x7b   : > { %1229 = vmatmul.msk.f32.gmra.mxu1 %vm335_vm0, %v314_v28  ;;  %1245 = vmatmul.msk.f32.gmra.mxu3 %vm335_vm0, %v330_v29 }
  0x82   : > { %1198 = vmatmul.msk.f32.gmra.mxu0 %vm335_vm0, %v315_v30  ;;  %1214 = vmatmul.msk.f32.gmra.mxu2 %vm335_vm0, %v331_v31 }
  0x83   : > { %1230 = vmatmul.msk.f32.gmra.mxu1 %vm335_vm0, %v315_v30  ;;  %1246 = vmatmul.msk.f32.gmra.mxu3 %vm335_vm0, %v331_v31 }
  0x8a   : > { %1199 = vmatmul.msk.f32.gmra.mxu0 %vm335_vm0, %v316_v32  ;;  %1215 = vmatmul.msk.f32.gmra.mxu2 %vm335_vm0, %v332_v33 }
  0x8b   : > { %1231 = vmatmul.msk.f32.gmra.mxu1 %vm335_vm0, %v316_v32  ;;  %1247 = vmatmul.msk.f32.gmra.mxu3 %vm335_vm0, %v332_v33 }
  0x8f   : > { %v449_v34 = vpop.f32.mrf.mxu0 }
  0x90   : > { %v562_v35 = vpop.f32.mrf.mxu1 }
  0x91   : > { %v690_v36 = vmin.f32 %v449_v34, %v562_v35 }
  0x93   : > { %691 = vmin.xlane.f32.xlu0 %v690_v36 }
  0x95   : > { %v497_v37 = vpop.f32.mrf.mxu2 }
  0x96   : > { %v610_v38 = vpop.f32.mrf.mxu3 }
  0x97   : > { %v452_v39 = vpop.f32.mrf.mxu0  ;;  %v738_v40 = vmin.f32 %v497_v37, %v610_v38 }
  0x98   : > { %v565_v41 = vpop.f32.mrf.mxu1 }
  0x99   : > { %739 = vmin.xlane.f32.xlu1 %v738_v40  ;;  %v693_v42 = vmin.f32 %v452_v39, %v565_v41 }
  0x9b   : > { %694 = vmin.xlane.f32.xlu0 %v693_v42 }
  0x9d   : > { %v500_v43 = vpop.f32.mrf.mxu2 }
  0x9e   : > { %v932_v44 = vmin.f32 %v500_v43, %v497_v37  ;;  %v613_v45 = vpop.f32.mrf.mxu3 }
  0x9f   : > { %v969_v46 = vmin.f32 %v613_v45, %v610_v38  ;;  %v455_v47 = vpop.f32.mrf.mxu0  ;;  %v741_v48 = vmin.f32 %v500_v43, %v613_v45 }
  0xa0   : > { %v918_v49 = vmin.f32 %v449_v34, %v455_v47  ;;  %v568_v50 = vpop.f32.mrf.mxu1 }
  0xa1   : > { %v955_v51 = vmin.f32 %v562_v35, %v568_v50  ;;  %742 = vmin.xlane.f32.xlu2 %v741_v48  ;;  %v696_v52 = vmin.f32 %v455_v47, %v568_v50 }
  0xa3   : > { %697 = vmin.xlane.f32.xlu1 %v696_v52 }
  0xa5   : > { %v503_v53 = vpop.f32.mrf.mxu2 }
  0xa6   : > { %v934_v54 = vmin.f32 %v932_v44, %v503_v53  ;;  %v616_v55 = vpop.f32.mrf.mxu3 }
  0xa7   : > { %v1453_v56 = vmin.f32 %v969_v46, %v616_v55  ;;  %v458_v57 = vpop.f32.mrf.mxu0  ;;  %v744_v58 = vmin.f32 %v503_v53, %v616_v55  ;;  %v1304_v46 = vmov 1e+30  }
  0xa8   : > { %v919_v59 = vmin.f32 %v452_v39, %v458_v57  ;;  %v571_v60 = vpop.f32.mrf.mxu1  ;;  %269 = vst.msk [vmem:[#allocation2] sm:$0xff] %vm268_vm1, %v1304_v46 }
  0xa9   : > { %v956_v61 = vmin.f32 %v565_v41, %v571_v60  ;;  %745 = vmin.xlane.f32.xlu0 %v744_v58  ;;  %v699_v62 = vmin.f32 %v458_v57, %v571_v60  ;;  %270 = vst.msk [vmem:[#allocation2 + $0x8] sm:$0xff] %vm268_vm1, %v1304_v46 }
  0xaa   : > { %271 = vst.msk [vmem:[#allocation2 + $0x10] sm:$0xff] %vm268_vm1, %v1304_v46 }
  0xab   : > { %700 = vmin.xlane.f32.xlu1 %v699_v62  ;;  %272 = vst.msk [vmem:[#allocation2 + $0x18] sm:$0xff] %vm268_vm1, %v1304_v46 }
  0xac   : > { %273 = vst.msk [vmem:[#allocation2 + $0x20] sm:$0xff] %vm268_vm1, %v1304_v46 }
  0xad   : > { %v506_v63 = vpop.f32.mrf.mxu2  ;;  %274 = vst.msk [vmem:[#allocation2 + $0x28] sm:$0xff] %vm268_vm1, %v1304_v46 }
  0xae   : > { %v936_v0 = vmin.f32 %v934_v54, %v506_v63  ;;  %v1455_v1 = vpop.f32.mrf.mxu3  ;;  %275 = vst.msk [vmem:[#allocation2 + $0x30] sm:$0xff] %vm268_vm1, %v1304_v46 }
  0xaf   : > { %v973_v2 = vmin.f32 %v1453_v56, %v1455_v1  ;;  %v461_v3 = vpop.f32.mrf.mxu0  ;;  %v747_v4 = vmin.f32 %v506_v63, %v1455_v1  ;;  %276 = vst.msk [vmem:[#allocation2 + $0x38] sm:$0xff] %vm268_vm1, %v1304_v46 }
  0xb0   : > { %v1460_v5 = vmin.f32 %v918_v49, %v461_v3  ;;  %v574_v6 = vpop.f32.mrf.mxu1  ;;  %277 = vst.msk [vmem:[#allocation2 + $0x40] sm:$0xff] %vm268_vm1, %v1304_v46 }
  0xb1   : > { %v1462_v7 = vmin.f32 %v955_v51, %v574_v6  ;;  %v702_v8 = vmin.f32 %v461_v3, %v574_v6  ;;  %278 = vst.msk [vmem:[#allocation2 + $0x48] sm:$0xff] %vm268_vm1, %v1304_v46 }
  0xb2   : > { %279 = vst.msk [vmem:[#allocation2 + $0x50] sm:$0xff] %vm268_vm1, %v1304_v46 }
  0xb3   : > { %748 = vmin.xlane.f32.xlu1 %v747_v4  ;;  %703 = vmin.xlane.f32.xlu2 %v702_v8  ;;  %280 = vst.msk [vmem:[#allocation2 + $0x58] sm:$0xff] %vm268_vm1, %v1304_v46 }
  0xb4   : > { %281 = vst.msk [vmem:[#allocation2 + $0x60] sm:$0xff] %vm268_vm1, %v1304_v46 }
  0xb5   : > { %v509_v9 = vpop.f32.mrf.mxu2  ;;  %282 = vst.msk [vmem:[#allocation2 + $0x68] sm:$0xff] %vm268_vm1, %v1304_v46 }
  0xb6   : > { %v1464_v10 = vmin.f32 %v509_v9, %v936_v0  ;;  %v1466_v11 = vpop.f32.mrf.mxu3  ;;  %283 = vst.msk [vmem:[#allocation2 + $0x70] sm:$0xff] %vm268_vm1, %v1304_v46 }
  0xb7   : > { %v464_v12 = vpop.f32.mrf.mxu0  ;;  %v750_v13 = vmin.f32 %v509_v9, %v1466_v11  ;;  %v968_v54 = vmin.f32 %v1466_v11, %v973_v2  ;;  %284 = vst.msk [vmem:[#allocation2 + $0x78] sm:$0xff] %vm268_vm1, %v1304_v46 }
  0xb8   : > { %v1469_v14 = vmin.f32 %v919_v59, %v464_v12  ;;  %v577_v15 = vpop.f32.mrf.mxu1  ;;  %285 = vst.msk [vmem:[#allocation2 + $0x80] sm:$0xff] %vm268_vm1, %v1304_v46 }
  0xb9   : > { %v1471_v16 = vmin.f32 %v956_v61, %v577_v15  ;;  %v705_v22 = vmin.f32 %v464_v12, %v577_v15  ;;  %286 = vst.msk [vmem:[#allocation2 + $0x88] sm:$0xff] %vm268_vm1, %v1304_v46 }
  0xba   : > { %287 = vst.msk [vmem:[#allocation2 + $0x90] sm:$0xff] %vm268_vm1, %v1304_v46 }
  0xbb   : > { %751 = vmin.xlane.f32.xlu2 %v750_v13  ;;  %288 = vst.msk [vmem:[#allocation2 + $0x98] sm:$0xff] %vm268_vm1, %v1304_v46 }
  0xbc   : > { %289 = vst.msk [vmem:[#allocation2 + $0xa0] sm:$0xff] %vm268_vm1, %v1304_v46 }
  0xbd   : > { %v1473_v17 = vpop.f32.mrf.mxu2  ;;  %290 = vst.msk [vmem:[#allocation2 + $0xa8] sm:$0xff] %vm268_vm1, %v1304_v46 }
  0xbe   : > { %v1475_v18 = vpop.f32.mrf.mxu3  ;;  %v935_v1 = vmin.f32 %v1464_v10, %v1473_v17  ;;  %291 = vst.msk [vmem:[#allocation2 + $0xb0] sm:$0xff] %vm268_vm1, %v1304_v46 }
  0xbf   : > { %v1477_v19 = vpop.f32.mrf.mxu0  ;;  %v753_v20 = vmin.f32 %v1473_v17, %v1475_v18  ;;  %v970_v55 = vmin.f32 %v968_v54, %v1475_v18  ;;  %292 = vst.msk [vmem:[#allocation2 + $0xb8] sm:$0xff] %vm268_vm1, %v1304_v46 }
  0xc0   : > { %v1481_v21 = vpop.f32.mrf.mxu1  ;;  %293 = vst.msk [vmem:[#allocation2 + $0xc0] sm:$0xff] %vm268_vm1, %v1304_v46  ;;  %v922_v18 = vmin.f32 %v1460_v5, %v1477_v19 }
  0xc1   : > { %754 = vmin.xlane.f32.xlu0 %v753_v20  ;;  %v708_v27 = vmin.f32 %v1477_v19, %v1481_v21  ;;  %294 = vst.msk [vmem:[#allocation2 + $0xc8] sm:$0xff] %vm268_vm1, %v1304_v46 }
  0xc2   : > { %295 = vst.msk [vmem:[#allocation2 + $0xd0] sm:$0xff] %vm268_vm1, %v1304_v46 }
  0xc3   : > { %706 = vmin.xlane.f32.xlu2 %v705_v22  ;;  %296 = vst.msk [vmem:[#allocation2 + $0xd8] sm:$0xff] %vm268_vm1, %v1304_v46 }
  0xc4   : > { %297 = vst.msk [vmem:[#allocation2 + $0xe0] sm:$0xff] %vm268_vm1, %v1304_v46 }
  0xc5   : > { %v1483_v23 = vpop.f32.mrf.mxu2  ;;  %298 = vst.msk [vmem:[#allocation2 + $0xe8] sm:$0xff] %vm268_vm1, %v1304_v46 }
  0xc6   : > { %v628_v24 = vpop.f32.mrf.mxu3  ;;  %v937_v4 = vmin.f32 %v935_v1, %v1483_v23  ;;  %299 = vst.msk [vmem:[#allocation2 + $0xf0] sm:$0xff] %vm268_vm1, %v1304_v46 }
  0xc7   : > { %v1485_v25 = vpop.f32.mrf.mxu0  ;;  %v756_v26 = vmin.f32 %v1483_v23, %v628_v24  ;;  %v972_v57 = vmin.f32 %v970_v55, %v628_v24  ;;  %v959_v23 = vmin.f32 %v1462_v7, %v1481_v21  ;;  %300 = vst.msk [vmem:[#allocation2 + $0xf8] sm:$0xff] %vm268_vm1, %v1304_v46  ;;  %v658_v46 = vld [vmem:[#allocation2] sm:$0xff] }
  0xc8   : > { %v1490_v28 = vpop.f32.mrf.mxu1 }
  0xc9   : > { %757 = vmin.xlane.f32.xlu1 %v756_v26  ;;  %709 = vmin.xlane.f32.xlu0 %v708_v27  ;;  %v711_v33 = vmin.f32 %v1485_v25, %v1490_v28  ;;  %v960_v2 = vmin.f32 %v1471_v16, %v1490_v28 }
  0xcd   : > { %v1492_v29 = vpop.f32.mrf.mxu2 }
  0xce   : > { %v631_v30 = vpop.f32.mrf.mxu3  ;;  %v938_v10 = vmin.f32 %v1492_v29, %v937_v4 }
  0xcf   : > { %v1494_v31 = vpop.f32.mrf.mxu0  ;;  %v759_v32 = vmin.f32 %v1492_v29, %v631_v30  ;;  %v974_v59 = vmin.f32 %v972_v57, %v631_v30 }
  0xd0   : > { %v1499_v34 = vpop.f32.mrf.mxu1  ;;  %v924_v27 = vmin.f32 %v922_v18, %v1494_v31 }
  0xd1   : > { %760 = vmin.xlane.f32.xlu2 %v759_v32  ;;  %712 = vmin.xlane.f32.xlu1 %v711_v33  ;;  %v714_v39 = vmin.f32 %v1494_v31, %v1499_v34  ;;  %v961_v19 = vmin.f32 %v959_v23, %v1499_v34  ;;  %v660_v23 = vld [vmem:[#allocation2 + $0x10] sm:$0xff] }
  0xd5   : > { %v1501_v35 = vpop.f32.mrf.mxu2 }
  0xd6   : > { %v634_v36 = vpop.f32.mrf.mxu3  ;;  %v940_v20 = vmin.f32 %v938_v10, %v1501_v35 }
  0xd7   : > { %v1503_v37 = vpop.f32.mrf.mxu0  ;;  %v762_v38 = vmin.f32 %v1501_v35, %v634_v36  ;;  %v975_v0 = vmin.f32 %v634_v36, %v974_v59 }
  0xd8   : > { %v589_v40 = vpop.f32.mrf.mxu1 }
  0xd9   : > { %763 = vmin.xlane.f32.xlu0 %v762_v38  ;;  %715 = vmin.xlane.f32.xlu2 %v714_v39  ;;  %v717_v45 = vmin.f32 %v1503_v37, %v589_v40  ;;  %v962_v6 = vmin.f32 %v960_v2, %v589_v40  ;;  %v923_v38 = vmin.f32 %v1469_v14, %v1485_v25 }
  0xdd   : > { %v1508_v41 = vpop.f32.mrf.mxu2 }
  0xde   : > { %v637_v42 = vpop.f32.mrf.mxu3  ;;  %v942_v5 = vmin.f32 %v940_v20, %v1508_v41 }
  0xdf   : > { %v1510_v43 = vpop.f32.mrf.mxu0  ;;  %v765_v44 = vmin.f32 %v1508_v41, %v637_v42  ;;  %v977_v3 = vmin.f32 %v975_v0, %v637_v42 }
  0xe0   : > { %v1516_v47 = vpop.f32.mrf.mxu1  ;;  %v926_v7 = vmin.f32 %v924_v27, %v1510_v43 }
  0xe1   : > { %766 = vmin.xlane.f32.xlu1 %v765_v44  ;;  %718 = vmin.xlane.f32.xlu0 %v717_v45  ;;  %v720_v52 = vmin.f32 %v1510_v43, %v1516_v47  ;;  %v963_v29 = vmin.f32 %v961_v19, %v1516_v47  ;;  %v925_v44 = vmin.f32 %v923_v38, %v1503_v37 }
  0xe5   : > { %v1528_v48 = vpop.f32.mrf.mxu2 }
  0xe6   : > { %v640_v49 = vpop.f32.mrf.mxu3  ;;  %v944_v21 = vmin.f32 %v942_v5, %v1528_v48 }
  0xe7   : > { %v1534_v50 = vpop.f32.mrf.mxu0  ;;  %v768_v51 = vmin.f32 %v1528_v48, %v640_v49  ;;  %v979_v8 = vmin.f32 %v977_v3, %v640_v49 }
  0xe8   : > { %v595_v53 = vpop.f32.mrf.mxu1  ;;  %v927_v48 = vmin.f32 %v925_v44, %v1534_v50 }
  0xe9   : > { %769 = vmin.xlane.f32.xlu2 %v768_v51  ;;  %721 = vmin.xlane.f32.xlu1 %v720_v52  ;;  %v723_v62 = vmin.f32 %v1534_v50, %v595_v53  ;;  %v964_v12 = vmin.f32 %v962_v6, %v595_v53 }
  0xed   : > { %v1556_v56 = vpop.f32.mrf.mxu2 }
  0xee   : > { %v643_v58 = vpop.f32.mrf.mxu3  ;;  %v946_v31 = vmin.f32 %v944_v21, %v1556_v56 }
  0xef   : > { %v485_v60 = vpop.f32.mrf.mxu0  ;;  %v771_v61 = vmin.f32 %v1556_v56, %v643_v58  ;;  %v981_v13 = vmin.f32 %v979_v8, %v643_v58 }
  0xf0   : > { %v598_v63 = vpop.f32.mrf.mxu1  ;;  %v928_v32 = vmin.f32 %v926_v7, %v485_v60 }
  0xf1   : > { %772 = vmin.xlane.f32.xlu0 %v771_v61  ;;  %724 = vmin.xlane.f32.xlu2 %v723_v62  ;;  %v726_v17 = vmin.f32 %v485_v60, %v598_v63  ;;  %v965_v34 = vmin.f32 %v963_v29, %v598_v63  ;;  %v674_v61 = vld [vmem:[#allocation2 + $0x80] sm:$0xff]  ;;  %v659_v63 = vld [vmem:[#allocation2 + $0x8] sm:$0xff] }
  0xf5   : > { %v533_v9 = vpop.f32.mrf.mxu2 }
  0xf6   : > { %v646_v11 = vpop.f32.mrf.mxu3  ;;  %v939_v39 = vmin.f32 %v533_v9, %v946_v31  ;;  %v1006_v31 = vlaneseq }
  0xf7   : > { %v488_v15 = vpop.f32.mrf.mxu0  ;;  %v774_v16 = vmin.f32 %v533_v9, %v646_v11  ;;  %v983_v24 = vmin.f32 %v981_v13, %v646_v11 }
  0xf8   : > { %v601_v22 = vpop.f32.mrf.mxu1  ;;  %v929_v51 = vmin.f32 %v927_v48, %v488_v15  ;;  %vm1008_vm3 = vcmp.lt.s32.totalorder %v1006_v31, 256 }
  0xf9   : > { %v966_v26 = vmin.f32 %v964_v12, %v601_v22  ;;  %775 = vmin.xlane.f32.xlu1 %v774_v16  ;;  %727 = vmin.xlane.f32.xlu0 %v726_v17  ;;  %v729_v36 = vmin.f32 %v488_v15, %v601_v22  ;;  %v675_v17 = vld [vmem:[#allocation2 + $0x88] sm:$0xff] }
  0xfb   : > { %v976_v28 = vmin.f32 %v966_v26, %v983_v24 }
  0xfd   : > { %v536_v30 = vpop.f32.mrf.mxu2 }
  0xfe   : > { %v649_v33 = vpop.f32.mrf.mxu3 }
  0xff   : > { %v491_v35 = vpop.f32.mrf.mxu0  ;;  %v777_v59 = vmin.f32 %v536_v30, %v649_v33 }
 0x100   : > { %v930_v40 = vmin.f32 %v928_v32, %v491_v35  ;;  %v604_v41 = vpop.f32.mrf.mxu1  ;;  %v676_v32 = vld [vmem:[#allocation2 + $0x90] sm:$0xff] }
 0x101   : > { %v967_v42 = vmin.f32 %v965_v34, %v604_v41  ;;  %730 = vmin.xlane.f32.xlu1 %v729_v36  ;;  %v732_v43 = vmin.f32 %v491_v35, %v604_v41  ;;  %v661_v35 = vld [vmem:[#allocation2 + $0x18] sm:$0xff] }
 0x102   : > { %v941_v45 = vmin.f32 %v939_v39, %v930_v40 }
 0x103   : > { %v978_v47 = vmin.f32 %v976_v28, %v967_v42  ;;  %733 = vmin.xlane.f32.xlu2 %v732_v43 }
 0x104   : > { %v943_v55 = vmin.f32 %v941_v45, %v536_v30  ;;  %v677_v45 = vld [vmem:[#allocation2 + $0x98] sm:$0xff] }
 0x105   : > { %v539_v49 = vpop.f32.mrf.mxu2  ;;  %v980_v54 = vmin.f32 %v978_v47, %v649_v33  ;;  %v662_v47 = vld [vmem:[#allocation2 + $0x20] sm:$0xff] }
 0x106   : > { %v692_v52 = vpop.xlane.xlu0 %691  ;;  %v652_v53 = vpop.f32.mrf.mxu3 }
 0x107   : > { %v786_v14 = vmin.f32 %v658_v46, %v692_v52  ;;  %v494_v25 = vpop.f32.mrf.mxu0  ;;  %v780_v15 = vmin.f32 %v539_v49, %v652_v53 }
 0x108   : > { %v931_v57 = vmin.f32 %v929_v51, %v494_v25  ;;  %v607_v56 = vpop.f32.mrf.mxu1 }
 0x109   : > { %819 = vst.msk [vmem:[#allocation2] sm:$0xff] %vm268_vm1, %v786_v14  ;;  %v982_v37 = vmin.f32 %v980_v54, %v607_v56  ;;  %v735_v58 = vmin.f32 %v494_v25, %v607_v56  ;;  %v678_v54 = vld [vmem:[#allocation2 + $0xa0] sm:$0xff]  ;;  %v679_v56 = vld [vmem:[#allocation2 + $0xa8] sm:$0xff] }
 0x10a   : > { %v945_v60 = vmin.f32 %v943_v55, %v931_v57 }
 0x10b   : > { %778 = vmin.xlane.f32.xlu2 %v777_v59  ;;  %736 = vmin.xlane.f32.xlu0 %v735_v58  ;;  %v984_v0 = vmin.f32 %v982_v37, %v652_v53  ;;  %v663_v58 = vld [vmem:[#allocation2 + $0x28] sm:$0xff] }
 0x10c   : > { %v947_v50 = vmin.f32 %v945_v60, %v539_v49  ;;  %v740_v62 = vpop.xlane.xlu1 %739 }
 0x10d   : > { %v802_v1 = vmin.f32 %v674_v61, %v740_v62  ;;  %v542_v2 = vpop.f32.mrf.mxu2  ;;  %v680_v62 = vld [vmem:[#allocation2 + $0xb0] sm:$0xff] }
 0x10e   : > { %v695_v3 = vpop.xlane.xlu0 %694  ;;  %v948_v4 = vmin.f32 %v542_v2, %v947_v50  ;;  %v655_v6 = vpop.f32.mrf.mxu3 }
 0x10f   : > { %835 = vst.msk [vmem:[#allocation2 + $0x80] sm:$0xff] %vm268_vm1, %v802_v1  ;;  %v787_v8 = vmin.f32 %v659_v63, %v695_v3  ;;  %v985_v9 = vmin.f32 %v655_v6, %v984_v0  ;;  %v783_v10 = vmin.f32 %v542_v2, %v655_v6  ;;  %v664_v63 = vld [vmem:[#allocation2 + $0x30] sm:$0xff] }
 0x110   : > { %v854_v11 = vld [vmem:[#allocation2] sm:$0xff]  ;;  %v949_v12 = vrot.slane %v948_v4, 4 }
 0x111   : > { %886 = vst.msk [vmem:[%s1624_s26] sm:$0xff] %vm268_vm1, %v854_v11  ;;  %v986_v13 = vrot.slane %v985_v9, 4  ;;  %784 = vmin.xlane.f32.xlu1 %v783_v10 }
 0x112   : > { %820 = vst.msk [vmem:[#allocation2 + $0x8] sm:$0xff] %vm268_vm1, %v787_v8  ;;  %v950_v16 = vmin.f32 %v948_v4, %v949_v12  ;;  %v681_v8 = vld [vmem:[#allocation2 + $0xb8] sm:$0xff] }
 0x113   : > { %v987_v18 = vmin.f32 %v985_v9, %v986_v13  ;;  %781 = vmin.xlane.f32.xlu0 %v780_v15  ;;  %v665_v9 = vld [vmem:[#allocation2 + $0x38] sm:$0xff] }
 0x114   : > { %v951_v20 = vrot.slane %v950_v16, 2  ;;  %v743_v22 = vpop.xlane.xlu2 %742 }
 0x115   : > { %v988_v24 = vrot.slane %v987_v18, 2  ;;  %v803_v26 = vmin.f32 %v675_v17, %v743_v22  ;;  %v682_v17 = vld [vmem:[#allocation2 + $0xc0] sm:$0xff] }
 0x116   : > { %v870_v27 = vld [vmem:[#allocation2 + $0x80] sm:$0xff]  ;;  %v952_v5 = vmin.f32 %v950_v16, %v951_v20  ;;  %v698_v19 = vpop.xlane.xlu1 %697 }
 0x117   : > { %902 = vst.msk [vmem:[%s1624_s26 + $0x80] sm:$0xff] %vm268_vm1, %v870_v27  ;;  %v989_v28 = vmin.f32 %v987_v18, %v988_v24  ;;  %v788_v7 = vmin.f32 %v660_v23, %v698_v19  ;;  %v666_v18 = vld [vmem:[#allocation2 + $0x40] sm:$0xff]  ;;  %v667_v19 = vld [vmem:[#allocation2 + $0x48] sm:$0xff] }
 0x118   : > { %836 = vst.msk [vmem:[#allocation2 + $0x88] sm:$0xff] %vm268_vm1, %v803_v26  ;;  %v953_v29 = vrot.slane %v952_v5, 1 }
 0x119   : > { %v855_v21 = vld [vmem:[#allocation2 + $0x8] sm:$0xff]  ;;  %v990_v30 = vrot.slane %v989_v28, 1  ;;  %821 = vst.msk [vmem:[#allocation2 + $0x10] sm:$0xff] %vm268_vm1, %v788_v7 }
 0x11a   : > { %887 = vst.msk [vmem:[%s1624_s26 + $0x8] sm:$0xff] %vm268_vm1, %v855_v21  ;;  %v954_v36 = vmin.f32 %v952_v5, %v953_v29  ;;  %v683_v5 = vld [vmem:[#allocation2 + $0xc8] sm:$0xff] }
 0x11b   : > { %v991_v33 = vmin.f32 %v989_v28, %v990_v30 }
 0x11c   : > { %v746_v34 = vpop.xlane.xlu0 %745 }
 0x11d   : > { %v999_v38 = vrot.slane %v991_v33, 7  ;;  %v804_v39 = vmin.f32 %v676_v32, %v746_v34  ;;  %v684_v32 = vld [vmem:[#allocation2 + $0xd0] sm:$0xff] }
 0x11e   : > { %v701_v40 = vpop.xlane.xlu1 %700  ;;  %v668_v33 = vld [vmem:[#allocation2 + $0x50] sm:$0xff] }
 0x11f   : > { %v1001_v41 = vsel %vm1000_vm2, %v954_v36, %v999_v38  ;;  %v871_v42 = vld [vmem:[#allocation2 + $0x88] sm:$0xff]  ;;  %837 = vst.msk [vmem:[#allocation2 + $0x90] sm:$0xff] %vm268_vm1, %v804_v39  ;;  %v789_v43 = vmin.f32 %v661_v35, %v701_v40 }
 0x120   : > { %1010 = vst.msk [vmem:[%s263_s30] sm:$0x3] %vm1008_vm3, %v1001_v41  ;;  %v856_v44 = vld [vmem:[#allocation2 + $0x10] sm:$0xff]  ;;  %v685_v41 = vld [vmem:[#allocation2 + $0xd8] sm:$0xff] }
 0x121   : > { %903 = vst.msk [vmem:[%s1624_s26 + $0x88] sm:$0xff] %vm268_vm1, %v871_v42  ;;  %v669_v42 = vld [vmem:[#allocation2 + $0x58] sm:$0xff] }
 0x122   : > { %888 = vst.msk [vmem:[%s1624_s26 + $0x10] sm:$0xff] %vm268_vm1, %v856_v44 }
 0x123   : > { %822 = vst.msk [vmem:[#allocation2 + $0x18] sm:$0xff] %vm268_vm1, %v789_v43 }
 0x126   : > { %v872_v48 = vld [vmem:[#allocation2 + $0x90] sm:$0xff]  ;;  %v749_v46 = vpop.xlane.xlu1 %748  ;;  %v704_v49 = vpop.xlane.xlu2 %703 }
 0x127   : > { %904 = vst.msk [vmem:[%s1624_s26 + $0x90] sm:$0xff] %vm268_vm1, %v872_v48  ;;  %v805_v51 = vmin.f32 %v677_v45, %v749_v46  ;;  %v790_v52 = vmin.f32 %v662_v47, %v704_v49  ;;  %v686_v49 = vld [vmem:[#allocation2 + $0xe0] sm:$0xff] }
 0x129   : > { %838 = vst.msk [vmem:[#allocation2 + $0x98] sm:$0xff] %vm268_vm1, %v805_v51  ;;  %v670_v51 = vld [vmem:[#allocation2 + $0x60] sm:$0xff] }
 0x12a   : > { %v857_v53 = vld [vmem:[#allocation2 + $0x18] sm:$0xff]  ;;  %823 = vst.msk [vmem:[#allocation2 + $0x20] sm:$0xff] %vm268_vm1, %v790_v52 }
 0x12b   : > { %889 = vst.msk [vmem:[%s1624_s26 + $0x18] sm:$0xff] %vm268_vm1, %v857_v53 }
 0x12e   : > { %v752_v14 = vpop.xlane.xlu2 %751 }
 0x12f   : > { %v806_v25 = vmin.f32 %v678_v54, %v752_v14 }
 0x130   : > { %v873_v55 = vld [vmem:[#allocation2 + $0x98] sm:$0xff] }
 0x131   : > { %905 = vst.msk [vmem:[%s1624_s26 + $0x98] sm:$0xff] %vm268_vm1, %v873_v55  ;;  %v858_v57 = vld [vmem:[#allocation2 + $0x20] sm:$0xff] }
 0x132   : > { %890 = vst.msk [vmem:[%s1624_s26 + $0x20] sm:$0xff] %vm268_vm1, %v858_v57  ;;  %v671_v57 = vld [vmem:[#allocation2 + $0x68] sm:$0xff] }
 0x133   : > { %839 = vst.msk [vmem:[#allocation2 + $0xa0] sm:$0xff] %vm268_vm1, %v806_v25 }
 0x134   : > { %v755_v37 = vpop.xlane.xlu0 %754 }
 0x135   : > { %v807_v59 = vmin.f32 %v679_v56, %v755_v37  ;;  %v672_v37 = vld [vmem:[#allocation2 + $0x70] sm:$0xff] }
 0x136   : > { %v707_v60 = vpop.xlane.xlu2 %706 }
 0x137   : > { %840 = vst.msk [vmem:[#allocation2 + $0xa8] sm:$0xff] %vm268_vm1, %v807_v59  ;;  %v791_v61 = vmin.f32 %v663_v58, %v707_v60 }
 0x139   : > { %824 = vst.msk [vmem:[#allocation2 + $0x28] sm:$0xff] %vm268_vm1, %v791_v61 }
 0x13a   : > { %v874_v50 = vld [vmem:[#allocation2 + $0xa0] sm:$0xff] }
 0x13b   : > { %906 = vst.msk [vmem:[%s1624_s26 + $0xa0] sm:$0xff] %vm268_vm1, %v874_v50 }
 0x13c   : > { %v758_v0 = vpop.xlane.xlu1 %757  ;;  %v710_v1 = vpop.xlane.xlu0 %709 }
 0x13d   : > { %v808_v2 = vmin.f32 %v680_v62, %v758_v0  ;;  %v792_v4 = vmin.f32 %v664_v63, %v710_v1  ;;  %v687_v62 = vld [vmem:[#allocation2 + $0xe8] sm:$0xff]  ;;  %v673_v63 = vld [vmem:[#allocation2 + $0x78] sm:$0xff] }
 0x13e   : > { %v875_v3 = vld [vmem:[#allocation2 + $0xa8] sm:$0xff] }
 0x13f   : > { %907 = vst.msk [vmem:[%s1624_s26 + $0xa8] sm:$0xff] %vm268_vm1, %v875_v3 }
 0x140   : > { %v859_v6 = vld [vmem:[#allocation2 + $0x28] sm:$0xff]  ;;  %841 = vst.msk [vmem:[#allocation2 + $0xb0] sm:$0xff] %vm268_vm1, %v808_v2 }
 0x141   : > { %891 = vst.msk [vmem:[%s1624_s26 + $0x28] sm:$0xff] %vm268_vm1, %v859_v6 }
 0x142   : > { %825 = vst.msk [vmem:[#allocation2 + $0x30] sm:$0xff] %vm268_vm1, %v792_v4 }
 0x144   : > { %v761_v10 = vpop.xlane.xlu2 %760  ;;  %v713_v11 = vpop.xlane.xlu1 %712 }
 0x145   : > { %v809_v12 = vmin.f32 %v681_v8, %v761_v10  ;;  %v793_v13 = vmin.f32 %v665_v9, %v713_v11  ;;  %v689_v8 = vld [vmem:[#allocation2 + $0xf8] sm:$0xff]  ;;  %v688_v10 = vld [vmem:[#allocation2 + $0xf0] sm:$0xff] }
 0x147   : > { %v876_v15 = vld [vmem:[#allocation2 + $0xb0] sm:$0xff]  ;;  %842 = vst.msk [vmem:[#allocation2 + $0xb8] sm:$0xff] %vm268_vm1, %v809_v12 }
 0x148   : > { %908 = vst.msk [vmem:[%s1624_s26 + $0xb0] sm:$0xff] %vm268_vm1, %v876_v15 }
 0x149   : > { %v860_v16 = vld [vmem:[#allocation2 + $0x30] sm:$0xff]  ;;  %826 = vst.msk [vmem:[#allocation2 + $0x38] sm:$0xff] %vm268_vm1, %v793_v13 }
 0x14a   : > { %892 = vst.msk [vmem:[%s1624_s26 + $0x30] sm:$0xff] %vm268_vm1, %v860_v16 }
 0x14c   : > { %v764_v20 = vpop.xlane.xlu0 %763  ;;  %v716_v22 = vpop.xlane.xlu2 %715 }
 0x14d   : > { %v810_v23 = vmin.f32 %v682_v17, %v764_v20  ;;  %v794_v26 = vmin.f32 %v666_v18, %v716_v22 }
 0x14e   : > { %v877_v24 = vld [vmem:[#allocation2 + $0xb8] sm:$0xff] }
 0x14f   : > { %909 = vst.msk [vmem:[%s1624_s26 + $0xb8] sm:$0xff] %vm268_vm1, %v877_v24 }
 0x150   : > { %v861_v27 = vld [vmem:[#allocation2 + $0x38] sm:$0xff]  ;;  %843 = vst.msk [vmem:[#allocation2 + $0xc0] sm:$0xff] %vm268_vm1, %v810_v23 }
 0x151   : > { %893 = vst.msk [vmem:[%s1624_s26 + $0x38] sm:$0xff] %vm268_vm1, %v861_v27 }
 0x152   : > { %827 = vst.msk [vmem:[#allocation2 + $0x40] sm:$0xff] %vm268_vm1, %v794_v26 }
 0x154   : > { %v767_v28 = vpop.xlane.xlu1 %766  ;;  %v719_v7 = vpop.xlane.xlu0 %718 }
 0x155   : > { %v811_v21 = vmin.f32 %v683_v5, %v767_v28  ;;  %v795_v29 = vmin.f32 %v667_v19, %v719_v7 }
 0x157   : > { %v878_v30 = vld [vmem:[#allocation2 + $0xc0] sm:$0xff]  ;;  %844 = vst.msk [vmem:[#allocation2 + $0xc8] sm:$0xff] %vm268_vm1, %v811_v21 }
 0x158   : > { %910 = vst.msk [vmem:[%s1624_s26 + $0xc0] sm:$0xff] %vm268_vm1, %v878_v30 }
 0x159   : > { %v862_v31 = vld [vmem:[#allocation2 + $0x40] sm:$0xff]  ;;  %828 = vst.msk [vmem:[#allocation2 + $0x48] sm:$0xff] %vm268_vm1, %v795_v29 }
 0x15a   : > { %894 = vst.msk [vmem:[%s1624_s26 + $0x40] sm:$0xff] %vm268_vm1, %v862_v31 }
 0x15c   : > { %v770_v34 = vpop.xlane.xlu2 %769  ;;  %v722_v35 = vpop.xlane.xlu1 %721 }
 0x15d   : > { %v812_v36 = vmin.f32 %v684_v32, %v770_v34  ;;  %v796_v39 = vmin.f32 %v668_v33, %v722_v35 }
 0x15e   : > { %v879_v38 = vld [vmem:[#allocation2 + $0xc8] sm:$0xff] }
 0x15f   : > { %911 = vst.msk [vmem:[%s1624_s26 + $0xc8] sm:$0xff] %vm268_vm1, %v879_v38 }
 0x160   : > { %v863_v40 = vld [vmem:[#allocation2 + $0x48] sm:$0xff]  ;;  %845 = vst.msk [vmem:[#allocation2 + $0xd0] sm:$0xff] %vm268_vm1, %v812_v36 }
 0x161   : > { %895 = vst.msk [vmem:[%s1624_s26 + $0x48] sm:$0xff] %vm268_vm1, %v863_v40 }
 0x162   : > { %829 = vst.msk [vmem:[#allocation2 + $0x50] sm:$0xff] %vm268_vm1, %v796_v39 }
 0x164   : > { %v773_v43 = vpop.xlane.xlu0 %772  ;;  %v725_v44 = vpop.xlane.xlu2 %724 }
 0x165   : > { %v813_v45 = vmin.f32 %v685_v41, %v773_v43  ;;  %v797_v47 = vmin.f32 %v669_v42, %v725_v44 }
 0x167   : > { %v880_v48 = vld [vmem:[#allocation2 + $0xd0] sm:$0xff]  ;;  %846 = vst.msk [vmem:[#allocation2 + $0xd8] sm:$0xff] %vm268_vm1, %v813_v45 }
 0x168   : > { %912 = vst.msk [vmem:[%s1624_s26 + $0xd0] sm:$0xff] %vm268_vm1, %v880_v48 }
 0x169   : > { %v864_v46 = vld [vmem:[#allocation2 + $0x50] sm:$0xff]  ;;  %830 = vst.msk [vmem:[#allocation2 + $0x58] sm:$0xff] %vm268_vm1, %v797_v47 }
 0x16a   : > { %896 = vst.msk [vmem:[%s1624_s26 + $0x50] sm:$0xff] %vm268_vm1, %v864_v46 }
 0x16c   : > { %v776_v52 = vpop.xlane.xlu1 %775  ;;  %v728_v53 = vpop.xlane.xlu0 %727 }
 0x16d   : > { %v814_v54 = vmin.f32 %v686_v49, %v776_v52  ;;  %v798_v25 = vmin.f32 %v670_v51, %v728_v53 }
 0x16e   : > { %v881_v14 = vld [vmem:[#allocation2 + $0xd8] sm:$0xff] }
 0x16f   : > { %913 = vst.msk [vmem:[%s1624_s26 + $0xd8] sm:$0xff] %vm268_vm1, %v881_v14 }
 0x170   : > { %v865_v55 = vld [vmem:[#allocation2 + $0x58] sm:$0xff]  ;;  %847 = vst.msk [vmem:[#allocation2 + $0xe0] sm:$0xff] %vm268_vm1, %v814_v54 }
 0x171   : > { %897 = vst.msk [vmem:[%s1624_s26 + $0x58] sm:$0xff] %vm268_vm1, %v865_v55 }
 0x172   : > { %831 = vst.msk [vmem:[#allocation2 + $0x60] sm:$0xff] %vm268_vm1, %v798_v25 }
 0x174   : > { %v731_v56 = vpop.xlane.xlu1 %730 }
 0x175   : > { %v799_v58 = vmin.f32 %v671_v57, %v731_v56 }
 0x176   : > { %v734_v59 = vpop.xlane.xlu2 %733 }
 0x177   : > { %v882_v60 = vld [vmem:[#allocation2 + $0xe0] sm:$0xff]  ;;  %832 = vst.msk [vmem:[#allocation2 + $0x68] sm:$0xff] %vm268_vm1, %v799_v58  ;;  %v800_v61 = vmin.f32 %v672_v37, %v734_v59 }
 0x178   : > { %914 = vst.msk [vmem:[%s1624_s26 + $0xe0] sm:$0xff] %vm268_vm1, %v882_v60 }
 0x179   : > { %v866_v50 = vld [vmem:[#allocation2 + $0x60] sm:$0xff]  ;;  %833 = vst.msk [vmem:[#allocation2 + $0x70] sm:$0xff] %vm268_vm1, %v800_v61 }
 0x17a   : > { %898 = vst.msk [vmem:[%s1624_s26 + $0x60] sm:$0xff] %vm268_vm1, %v866_v50 }
 0x17e   : > { %v867_v0 = vld [vmem:[#allocation2 + $0x68] sm:$0xff]  ;;  %v779_v1 = vpop.xlane.xlu2 %778  ;;  %v737_v2 = vpop.xlane.xlu0 %736 }
 0x17f   : > { %899 = vst.msk [vmem:[%s1624_s26 + $0x68] sm:$0xff] %vm268_vm1, %v867_v0  ;;  %v815_v3 = vmin.f32 %v687_v62, %v779_v1  ;;  %v801_v4 = vmin.f32 %v673_v63, %v737_v2 }
 0x180   : > { %v868_v6 = vld [vmem:[#allocation2 + $0x70] sm:$0xff] }
 0x181   : > { %900 = vst.msk [vmem:[%s1624_s26 + $0x70] sm:$0xff] %vm268_vm1, %v868_v6 }
 0x182   : > { %848 = vst.msk [vmem:[#allocation2 + $0xe8] sm:$0xff] %vm268_vm1, %v815_v3 }
 0x183   : > { %834 = vst.msk [vmem:[#allocation2 + $0x78] sm:$0xff] %vm268_vm1, %v801_v4 }
 0x184   : > { %v785_v9 = vpop.xlane.xlu1 %784 }
 0x185   : > { %v817_v11 = vmin.f32 %v689_v8, %v785_v9 }
 0x186   : > { %v782_v12 = vpop.xlane.xlu0 %781 }
 0x187   : > { %850 = vst.msk [vmem:[#allocation2 + $0xf8] sm:$0xff] %vm268_vm1, %v817_v11  ;;  %v816_v13 = vmin.f32 %v688_v10, %v782_v12 }
 0x189   : > { %v883_v15 = vld [vmem:[#allocation2 + $0xe8] sm:$0xff]  ;;  %849 = vst.msk [vmem:[#allocation2 + $0xf0] sm:$0xff] %vm268_vm1, %v816_v13 }
 0x18a   : > { %915 = vst.msk [vmem:[%s1624_s26 + $0xe8] sm:$0xff] %vm268_vm1, %v883_v15  ;;  %v869_v16 = vld [vmem:[#allocation2 + $0x78] sm:$0xff] }
 0x18b   : > { %901 = vst.msk [vmem:[%s1624_s26 + $0x78] sm:$0xff] %vm268_vm1, %v869_v16 }
 0x18e   : > { %v885_v17 = vld [vmem:[#allocation2 + $0xf8] sm:$0xff] }
 0x18f   : > { %917 = vst.msk [vmem:[%s1624_s26 + $0xf8] sm:$0xff] %vm268_vm1, %v885_v17 }
 0x190   : > { %v884_v18 = vld [vmem:[#allocation2 + $0xf0] sm:$0xff] }
 0x191   : > { %916 = vst.msk [vmem:[%s1624_s26 + $0xf0] sm:$0xff] %vm268_vm1, %v884_v18 }
 0x192 PF: > { %s14_s14 = sadd.s32 1, %s1302_s14   ;;  %s1738_s12 = smov %s1298_s13 }
 0x193   : > { %p11_p5 = scmp.ge.s32.totalorder %s14_s14, 6   ;;  %s1739_s13 = smov %s1741_s15 }
 0x195   :  { %13 = sbr.rel (!%p11_p5) target bundleno = 2 (0x2), region = 91 }

</bundles_post_ra>
